<compile_context>
chip_gen: v6e
topology: v6e:2x2x1
jax: 0.10.0
libtpu: 0.0.40
codegen_flags: <defaults>
</compile_context>

<pallas_src>
import functools
import math

import jax
import jax.numpy as jnp
from jax.experimental import pallas as pl
from jax.experimental.pallas import tpu as pltpu


def _round_up(v, m):
    return (v + m - 1) // m * m


def _pick_tile(n, target):
    """Largest multiple of 128 that divides n and is <= target (n % 128 == 0)."""
    t = min(target, n)
    t -= t % 128
    if t <= 0:
        return n
    while n % t:
        t -= 128
    return t


# ---------------------------------------------------------------------------
# Kernel 1: fused tiled matmul + alpha projection epilogue
#   xw    = (X @ W)            -> bf16
#   alpha = (X @ W) @ A        -> f32   (columns [0:H]=alpha_src, [H:2H]=alpha_dst)
# ---------------------------------------------------------------------------
def _matmul_alpha_kernel(x_ref, w_ref, a_ref, xw_ref, alpha_ref, *scratch,
                         k_steps):
    def finalize(acc):
        xw_ref[...] = acc.astype(xw_ref.dtype)
        alpha_ref[...] = jnp.dot(acc, a_ref[...],
                                 preferred_element_type=jnp.float32)

    if k_steps == 1:
        finalize(jnp.dot(x_ref[...], w_ref[...],
                         preferred_element_type=jnp.float32))
    else:
        acc_ref = scratch[0]

        @pl.when(pl.program_id(1) == 0)
        def _():
            acc_ref[...] = jnp.zeros_like(acc_ref)

        acc_ref[...] += jnp.dot(x_ref[...], w_ref[...],
                                preferred_element_type=jnp.float32)

        @pl.when(pl.program_id(1) == k_steps - 1)
        def _():
            finalize(acc_ref[...])


def matmul_alpha_pallas(x, w, a_mat, *, tm=256, tk=256,
                        xw_dtype=jnp.bfloat16):
    m, k = x.shape
    k2, n = w.shape
    n2, a_cols = a_mat.shape
    assert k == k2 and n == n2
    tm = _pick_tile(m, tm)
    tk = _pick_tile(k, tk)
    k_steps = k // tk
    kernel = functools.partial(_matmul_alpha_kernel, k_steps=k_steps)
    scratch = [] if k_steps == 1 else [pltpu.VMEM((tm, n), jnp.float32)]
    return pl.pallas_call(
        kernel,
        out_shape=(jax.ShapeDtypeStruct((m, n), xw_dtype),
                   jax.ShapeDtypeStruct((m, a_cols), jnp.float32)),
        grid_spec=pltpu.PrefetchScalarGridSpec(
            num_scalar_prefetch=0,
            grid=(m // tm, k_steps),
            in_specs=[
                pl.BlockSpec((tm, tk), lambda i, kk: (i, kk)),
                pl.BlockSpec((tk, n), lambda i, kk: (kk, 0)),
                pl.BlockSpec((n, a_cols), lambda i, kk: (0, 0)),
            ],
            out_specs=[
                pl.BlockSpec((tm, n), lambda i, kk: (i, 0)),
                pl.BlockSpec((tm, a_cols), lambda i, kk: (i, 0)),
            ],
            scratch_shapes=scratch),
        compiler_params=pltpu.CompilerParams(
            dimension_semantics=("parallel", "arbitrary"),
            vmem_limit_bytes=32 * 1024 * 1024),
    )(x, w, a_mat)


# ---------------------------------------------------------------------------
# Kernel 2: fused GAT attention (LeakyReLU logits -> masked online softmax ->
#           per-head aggregation), bias / head-mean / ReLU at finalize.
# ---------------------------------------------------------------------------
def _gat_attn_kernel(adst_ref, asrc_ref, mask_ref, xw_ref, bias_ref, o_ref,
                     m_sc, l_sc, acc_sc, *, heads, head_dim, mean_heads,
                     apply_relu, tile_j, xw_resident):
    j = pl.program_id(1)

    @pl.when(j == 0)
    def _():
        m_sc[...] = jnp.full_like(m_sc, -jnp.inf)
        l_sc[...] = jnp.zeros_like(l_sc)
        acc_sc[...] = jnp.zeros_like(acc_sc)

    # additive mask bias: 0 for edges, -1e30 for non-edges (int8 -> f32 once,
    # shared across all heads; replaces per-head cmp+select)
    neg_bias = (mask_ref[...].astype(jnp.float32) - 1.0) * 1e30   # (ti, tj)
    adst = adst_ref[...]                                          # (ti, H) f32

    if xw_resident:
        off = pl.multiple_of(j * tile_j, tile_j)
        asrc = asrc_ref[:, pl.ds(off, tile_j)]                    # (H, tj)
        xw = xw_ref[pl.ds(off, tile_j), :]                        # (tj, H*C) bf16
    else:
        asrc = asrc_ref[...]
        xw = xw_ref[...]

    rescale_cols = []
    pv_cols = []
    for h in range(heads):
        lo = h * head_dim
        # attention logits for this (row-tile, src-tile), head h
        e = adst[:, h:h + 1] + asrc[h:h + 1, :]                   # (ti, tj)
        e = jnp.maximum(e, 0.2 * e)                               # LeakyReLU(0.2)
        s = e + neg_bias                                          # mask non-edges
        # online softmax update
        m_prev = m_sc[h]                                          # (ti, 1)
        m_new = jnp.maximum(m_prev, jnp.max(s, axis=-1, keepdims=True))
        alpha = jnp.exp(m_prev - m_new)
        p = jnp.exp(s - m_new)                                    # (ti, tj)
        l_sc[h] = alpha * l_sc[h] + jnp.sum(p, axis=-1, keepdims=True)
        m_sc[h] = m_new
        rescale_cols.append(jnp.broadcast_to(alpha, (alpha.shape[0], head_dim)))
        pv_cols.append(jnp.dot(p.astype(xw.dtype), xw[:, lo:lo + head_dim],
                               preferred_element_type=jnp.float32))

    # single lane-dense accumulator update across all heads
    if heads > 1:
        rescale = jnp.concatenate(rescale_cols, axis=-1)          # (ti, H*C)
        pv = jnp.concatenate(pv_cols, axis=-1)                    # (ti, H*C)
    else:
        rescale, pv = rescale_cols[0], pv_cols[0]
    acc_sc[...] = rescale * acc_sc[...] + pv

    @pl.when(j == pl.num_programs(1) - 1)
    def _():
        # normalize each head by its softmax denominator (full-width multiply)
        inv_cols = []
        for h in range(heads):
            inv = pl.reciprocal(l_sc[h], approx=True)             # (ti, 1)
            inv_cols.append(jnp.broadcast_to(inv, (inv.shape[0], head_dim)))
        inv_full = (jnp.concatenate(inv_cols, axis=-1)
                    if heads > 1 else inv_cols[0])
        acc = acc_sc[...] * inv_full
        if mean_heads:                                            # concat=False
            out = acc[:, 0:head_dim]
            for h in range(1, heads):
                out = out + acc[:, h * head_dim:(h + 1) * head_dim]
            out = out * (1.0 / heads)
        else:                                                     # concat=True
            out = acc
        out = out + bias_ref[...]
        if apply_relu:
            out = jnp.maximum(out, 0.0)
        o_ref[...] = out.astype(o_ref.dtype)


def gat_attention(alpha_dst, alpha_src_t, mask, xw, bias, *, heads, head_dim,
                  mean_heads, apply_relu, out_dtype=jnp.float32,
                  tile_i=256, tile_j=512, resident_budget=6 * 1024 * 1024):
    n_pad = mask.shape[0]
    agg_dim = heads * head_dim
    out_dim = head_dim if mean_heads else agg_dim
    tile_i = _pick_tile(n_pad, tile_i)
    tile_j = _pick_tile(n_pad, tile_j)
    # keep xw (and alpha_src^T) VMEM-resident when small enough: eliminates
    # re-streaming xw once per row tile (conservative budget incl. buffering).
    xw_resident = (n_pad * agg_dim * xw.dtype.itemsize) <= resident_budget

    kernel = functools.partial(
        _gat_attn_kernel, heads=heads, head_dim=head_dim,
        mean_heads=mean_heads, apply_relu=apply_relu,
        tile_j=tile_j, xw_resident=xw_resident)

    if xw_resident:
        asrc_spec = pl.BlockSpec((heads, n_pad), lambda i, j: (0, 0))
        xw_spec = pl.BlockSpec((n_pad, agg_dim), lambda i, j: (0, 0))
    else:
        asrc_spec = pl.BlockSpec((heads, tile_j), lambda i, j: (0, j))
        xw_spec = pl.BlockSpec((tile_j, agg_dim), lambda i, j: (j, 0))

    return pl.pallas_call(
        kernel,
        out_shape=jax.ShapeDtypeStruct((n_pad, out_dim), out_dtype),
        grid_spec=pltpu.PrefetchScalarGridSpec(
            num_scalar_prefetch=0,
            grid=(n_pad // tile_i, n_pad // tile_j),
            in_specs=[
                pl.BlockSpec((tile_i, heads), lambda i, j: (i, 0)),   # alpha_dst
                asrc_spec,                                            # alpha_src^T
                pl.BlockSpec((tile_i, tile_j), lambda i, j: (i, j)),  # int8 mask
                xw_spec,                                              # xw (bf16)
                pl.BlockSpec((1, out_dim), lambda i, j: (0, 0)),      # bias
            ],
            out_specs=pl.BlockSpec((tile_i, out_dim), lambda i, j: (i, 0)),
            scratch_shapes=[
                pltpu.VMEM((heads, tile_i, 1), jnp.float32),   # running max
                pltpu.VMEM((heads, tile_i, 1), jnp.float32),   # running sum
                pltpu.VMEM((tile_i, agg_dim), jnp.float32),    # accumulator
            ]),
        compiler_params=pltpu.CompilerParams(
            dimension_semantics=("parallel", "arbitrary"),
            vmem_limit_bytes=32 * 1024 * 1024),
    )(alpha_dst, alpha_src_t, mask, xw, bias)


# ---------------------------------------------------------------------------
# Glue: padding, adjacency mask, one GATConv layer, full forward.
# ---------------------------------------------------------------------------
def build_attention_mask(edge_index, num_nodes, n_pad):
    """Dense 0/1 int8 mask: mask[i, j] = 1 iff edge j -> i exists (+ self loops)."""
    src, dst = edge_index[0], edge_index[1]
    m = jnp.zeros((n_pad, n_pad), jnp.int8)
    m = m.at[dst, src].set(1)                   # messages flow src -> dst
    idx = jnp.arange(num_nodes)
    m = m.at[idx, idx].set(1)                   # self loops on real nodes only
    return m


def gat_conv(x, mask_i8, layer, *, apply_relu):
    """One GATConv layer.  x: (n_pad, c_in), mask_i8: (n_pad, n_pad) int8."""
    n_pad, c_in = x.shape
    heads, head_dim, concat = layer["heads"], layer["head_dim"], layer["concat"]

    # --- pad channel dims so the kernels see 128-aligned, lane-dense blocks ---
    c_in_pad = _round_up(c_in, 128)
    pad_unit = 128 // math.gcd(heads, 128)
    hd_pad = _round_up(head_dim, pad_unit)
    agg_pad = heads * hd_pad                    # multiple of 128

    w = layer["w"].reshape(c_in, heads, head_dim)
    w = jnp.pad(w, ((0, c_in_pad - c_in), (0, 0), (0, hd_pad - head_dim)))
    w = w.reshape(c_in_pad, agg_pad)
    att_src = jnp.pad(layer["att_src"], ((0, 0), (0, hd_pad - head_dim)))
    att_dst = jnp.pad(layer["att_dst"], ((0, 0), (0, hd_pad - head_dim)))

    # projection matrix for the fused alpha epilogue:
    #   alpha[:, h]       = sum_c xw[:, h*hd+c] * att_src[h, c]
    #   alpha[:, H + h]   = sum_c xw[:, h*hd+c] * att_dst[h, c]
    a_cols = 128
    a_mat = jnp.zeros((agg_pad, a_cols), jnp.float32)
    for h in range(heads):
        a_mat = a_mat.at[h * hd_pad:(h + 1) * hd_pad, h].set(att_src[h])
        a_mat = a_mat.at[h * hd_pad:(h + 1) * hd_pad, heads + h].set(att_dst[h])

    if concat:
        bias = layer["bias"].reshape(heads, head_dim)
        bias = jnp.pad(bias, ((0, 0), (0, hd_pad - head_dim))).reshape(1, agg_pad)
    else:
        bias = jnp.pad(layer["bias"], (0, hd_pad - head_dim)).reshape(1, hd_pad)
    x_pad = jnp.pad(x, ((0, 0), (0, c_in_pad - c_in)))

    # 1) linear transform + alpha projections on the MXU (fused Pallas kernel,
    #    bf16 in, bf16 xw out, f32 alphas out)
    xw_bf, alpha = matmul_alpha_pallas(x_pad.astype(jnp.bfloat16),
                                       w.astype(jnp.bfloat16), a_mat)
    alpha_src = alpha[:, :heads]                 # (n_pad, H)
    alpha_dst = alpha[:, heads:2 * heads]        # (n_pad, H)
    alpha_src_t = alpha_src.T                    # (H, n_pad)  tiny XLA transpose

    # 2) fused masked softmax + aggregation (flash-style Pallas kernel)
    out_dtype = jnp.bfloat16 if apply_relu else jnp.float32
    out = gat_attention(alpha_dst, alpha_src_t, mask_i8, xw_bf, bias,
                        heads=heads, head_dim=hd_pad,
                        mean_heads=not concat, apply_relu=apply_relu,
                        out_dtype=out_dtype)

    # 3) strip channel padding back to the logical layout
    if concat:
        out = out.reshape(n_pad, heads, hd_pad)[:, :, :head_dim]
        out = out.reshape(n_pad, heads * head_dim)
    else:
        out = out[:, :head_dim]
    return out


def gat_forward(x, edge_index, params):
    """GAT.forward: conv -> (ReLU -> Dropout) for all but the last layer."""
    n, _ = x.shape
    n_pad = _round_up(n, 128)
    mask_i8 = build_attention_mask(edge_index, n, n_pad)
    h = jnp.zeros((n_pad, x.shape[1]), jnp.float32).at[:n, :].set(x)
    num_layers = len(params)
    for i, layer in enumerate(params):
        h = gat_conv(h, mask_i8, layer, apply_relu=(i != num_layers - 1))
        # Dropout in eval mode is identity.
    return h[:n, :]


# ---------------------------------------------------------------------------
# Parameter init (mirrors GAT.__init__ + init_weights xavier_uniform).
# ---------------------------------------------------------------------------
def xavier_uniform(key, shape):
    fan_in, fan_out = shape
    limit = math.sqrt(6.0 / (fan_in + fan_out))
    return jax.random.uniform(key, shape, jnp.float32, -limit, limit)


def init_gat_params(key, in_channels, hidden_channels, out_channels, heads):
    k1, k2, k3, k4, k5, k6 = jax.random.split(key, 6)
    layer1 = dict(
        w=xavier_uniform(k1, (in_channels, heads * hidden_channels)),
        att_src=xavier_uniform(k2, (heads, hidden_channels)),
        att_dst=xavier_uniform(k3, (heads, hidden_channels)),
        bias=jnp.zeros((heads * hidden_channels,), jnp.float32),
        heads=heads, head_dim=hidden_channels, concat=True)
    layer2 = dict(
        w=xavier_uniform(k4, (heads * hidden_channels, out_channels)),
        att_src=xavier_uniform(k5, (1, out_channels)),
        att_dst=xavier_uniform(k6, (1, out_channels)),
        bias=jnp.zeros((out_channels,), jnp.float32),
        heads=1, head_dim=out_channels, concat=False)
    return [layer1, layer2]


# ---------------------------------------------------------------------------
# Pure-JAX reference (dense GATConv math, f32) for the correctness check.
# ---------------------------------------------------------------------------
def _gat_conv_ref(x, mask, layer):
    heads, head_dim, concat = layer["heads"], layer["head_dim"], layer["concat"]
    n = x.shape[0]
    xw = x @ layer["w"]
    xw_h = xw.reshape(n, heads, head_dim)
    a_src = jnp.einsum("nhc,hc->nh", xw_h, layer["att_src"])
    a_dst = jnp.einsum("nhc,hc->nh", xw_h, layer["att_dst"])
    e = a_dst[:, None, :] + a_src[None, :, :]            # (dst, src, H)
    e = jnp.where(e > 0, e, 0.2 * e)                     # LeakyReLU(0.2)
    e = jnp.where(mask[:, :, None] > 0, e, -1e30)
    p = jax.nn.softmax(e, axis=1)
    out = jnp.einsum("nmh,mhc->nhc", p, xw_h)
    out = out.reshape(n, heads * head_dim) if concat else out.mean(axis=1)
    return out + layer["bias"][None, :]


def gat_forward_ref(x, edge_index, params):
    n = x.shape[0]
    mask = build_attention_mask(edge_index, n, n)
    h = x
    for i, layer in enumerate(params):
        h = _gat_conv_ref(h, mask, layer)
        if i != len(params) - 1:
            h = jnp.maximum(h, 0.0)
    return h


if __name__ == "__main__":
    key = jax.random.PRNGKey(0)

    # Small, module-consistent shapes.
    num_nodes = 16
    in_channels = 16
    hidden_channels = 32
    out_channels = 8
    heads = 4
    num_edges = 48

    k_x, k_e, k_p = jax.random.split(key, 3)
    x = jax.random.normal(k_x, (num_nodes, in_channels), jnp.float32)
    edge_index = jax.random.randint(k_e, (2, num_edges), 0, num_nodes,
                                    jnp.int32)

    params = init_gat_params(k_p, in_channels, hidden_channels, out_channels,
                             heads)

    out = gat_forward(x, edge_index, params)
    out = jax.block_until_ready(out)

    ref = gat_forward_ref(x, edge_index, params)
    assert out.shape == (num_nodes, out_channels), out.shape
    max_err = float(jnp.max(jnp.abs(out - ref)))
    assert jnp.allclose(out, ref, atol=2e-2, rtol=2e-2), (
        f"mismatch vs reference (max abs err = {max_err})")

    print("KERNEL_OK")
</pallas_src>

<mosaic_0001>
module attributes {stable_mosaic.version = 11 : i64} {
  func.func @_matmul_alpha_kernel(%arg0: i32, %arg1: i32, %arg2: memref<128x128xbf16, #tpu.memory_space<vmem>>, %arg3: memref<128x128xbf16, #tpu.memory_space<vmem>>, %arg4: memref<128x128xf32, #tpu.memory_space<vmem>>, %arg5: memref<128x128xbf16, #tpu.memory_space<vmem>>, %arg6: memref<128x128xf32, #tpu.memory_space<vmem>>) attributes {dimension_semantics = [#tpu.dimension_semantics<parallel>, #tpu.dimension_semantics<arbitrary>], iteration_bounds = array<i64: 1, 1>, scalar_prefetch = 0 : i64, scratch_operands = 0 : i64, tpu.core_type = #tpu.core_type<tc>, window_params = [{transform_indices = @transform_0, window_bounds = array<i64: 128, 128>}, {transform_indices = @transform_1, window_bounds = array<i64: 128, 128>}, {pipeline_mode = #tpu.pipeline_mode<synchronous>, transform_indices = @transform_2, window_bounds = array<i64: 128, 128>}, {transform_indices = @transform_3, window_bounds = array<i64: 128, 128>}, {transform_indices = @transform_4, window_bounds = array<i64: 128, 128>}]} {
    %c0 = arith.constant 0 : index
    %c0_0 = arith.constant 0 : index
    %0 = vector.load %arg2[%c0, %c0_0] : memref<128x128xbf16, #tpu.memory_space<vmem>>, vector<128x128xbf16>
    %c0_1 = arith.constant 0 : index
    %c0_2 = arith.constant 0 : index
    %1 = vector.load %arg3[%c0_1, %c0_2] : memref<128x128xbf16, #tpu.memory_space<vmem>>, vector<128x128xbf16>
    %cst = arith.constant dense<0.000000e+00> : vector<128x128xf32>
    %2 = tpu.matmul %0, %1, %cst {dimension_numbers = #tpu.dot_dimension_numbers<[1], [0], [0], [1], [0, 0, 1, 1], [], []>} : vector<128x128xbf16>, vector<128x128xbf16>, vector<128x128xf32> -> vector<128x128xf32>
    %3 = arith.truncf %2 : vector<128x128xf32> to vector<128x128xbf16>
    %c0_3 = arith.constant 0 : index
    %c0_4 = arith.constant 0 : index
    %4 = vector.load %arg5[%c0_3, %c0_4] : memref<128x128xbf16, #tpu.memory_space<vmem>>, vector<128x128xbf16>
    tpu.vector_store %arg5[%c0_3, %c0_4], %3 {strides = array<i32>} : memref<128x128xbf16, #tpu.memory_space<vmem>>, vector<128x128xbf16>,
    %c0_5 = arith.constant 0 : index
    %c0_6 = arith.constant 0 : index
    %5 = vector.load %arg4[%c0_5, %c0_6] : memref<128x128xf32, #tpu.memory_space<vmem>>, vector<128x128xf32>
    %cst_7 = arith.constant dense<0.000000e+00> : vector<128x128xf32>
    %6 = tpu.matmul %2, %5, %cst_7 {dimension_numbers = #tpu.dot_dimension_numbers<[1], [0], [0], [1], [0, 0, 1, 1], [], []>} : vector<128x128xf32>, vector<128x128xf32>, vector<128x128xf32> -> vector<128x128xf32>
    %c0_8 = arith.constant 0 : index
    %c0_9 = arith.constant 0 : index
    %7 = vector.load %arg6[%c0_8, %c0_9] : memref<128x128xf32, #tpu.memory_space<vmem>>, vector<128x128xf32>
    tpu.vector_store %arg6[%c0_8, %c0_9], %6 {strides = array<i32>} : memref<128x128xf32, #tpu.memory_space<vmem>>, vector<128x128xf32>,
    return
  }
  func.func @transform_0(%arg0: i32, %arg1: i32) -> (i32, i32) {
    %c0_i32 = arith.constant 0 : i32
    return %arg0, %arg1 : i32, i32
  }
  func.func @transform_1(%arg0: i32, %arg1: i32) -> (i32, i32) {
    %c0_i32 = arith.constant 0 : i32
    %c0_i32_0 = arith.constant 0 : i32
    return %arg1, %c0_i32 : i32, i32
  }
  func.func @transform_2(%arg0: i32, %arg1: i32) -> (i32, i32) {
    %c0_i32 = arith.constant 0 : i32
    %c0_i32_0 = arith.constant 0 : i32
    %c0_i32_1 = arith.constant 0 : i32
    return %c0_i32, %c0_i32_0 : i32, i32
  }
  func.func @transform_3(%arg0: i32, %arg1: i32) -> (i32, i32) {
    %c0_i32 = arith.constant 0 : i32
    %c0_i32_0 = arith.constant 0 : i32
    return %arg0, %c0_i32 : i32, i32
  }
  func.func @transform_4(%arg0: i32, %arg1: i32) -> (i32, i32) {
    %c0_i32 = arith.constant 0 : i32
    %c0_i32_0 = arith.constant 0 : i32
    return %arg0, %c0_i32 : i32, i32
  }
}

</mosaic_0001>

<bundles_post_ra>
// kernel: tpu_custom_call.1
= control target key start
LH: loop header
LB: loop body
LE: loop exit
PB: predicated region body
PF: predicated region fallthrough
CT: control target
= control target key end

     0   :  { %10 = vsyncpa [#allocation3], 0  ;;  %s1004_s0 = inlined_call_operand.hbm [shape: bf16[128,128], index: 0, kind: input, shape index: {}]   ;;  %s1005_s1 = inlined_call_operand.hbm [shape: bf16[128,128], index: 1, kind: input, shape index: {}]   ;;  %s1006_s2 = inlined_call_operand.hbm [shape: f32[128,128], index: 2, kind: input, shape index: {}]   ;;  %s1007_s3 = inlined_call_operand.hbm [shape: bf16[128,128], index: 3, kind: output, shape index: {0}]   ;;  %s1008_s4 = inlined_call_operand.hbm [shape: f32[128,128], index: 4, kind: output, shape index: {1}]  }
   0x1   :  { %11 = vsyncpa [#allocation6], 0 }
   0x2   :  { %12 = vsyncpa [#allocation4], 0 }
   0x3   :  { %13 = vsyncpa [#allocation10], 0  ;;  %s940_s15 = smov [#allocation5]   ;;  %s941_s17 = smov [#allocation2]  }
   0x4   :  { %s31_s16 = sshll.u32 %s940_s15, 4  ;;  %s19_s18 = sshll.u32 %s941_s17, 4  ;;  %s32_s16 = int_to_ptr.vmem [resolvable:$true] %s31_s16  ;;  %s20_s18 = int_to_ptr.vmem [resolvable:$true] %s19_s18 }
   0x5   :  { %s840_s19 = scalar_lea.vmem %s32_s16, 1024  ;;  %p845_p1 = scmp.lt.s32.totalorder %s32_s16, %s32_s16 }
   0x6   :  { %p841_p0 = scmp.ne.s32.totalorder %s32_s16, %s840_s19  ;;  %p846_p2 = scmp.lt.s32.totalorder %s840_s19, %s840_s19 }
   0x8   :  { %p847_p3 = por %p846_p2, %p845_p1 }
   0xa   :  { %p848_p4 = pnand %p847_p3, %p841_p0 }
   0xc   :  { %851 = shalt.err (!%p848_p4)
}
   0xd   :  { %s942_s20 = smov 64   ;;  %s943_s21 = smov 4  }
   0xe   :  { %37 = dma.hbm_to_vmem [thread:$0]  %s1005_s1, 1024, %s32_s16, [#allocation6], %s942_s20, %s942_s20, %s943_s21  }
   0xf   :  { %s860_s24 = scalar_lea.vmem %s20_s18, 1024  ;;  %p865_p6 = scmp.lt.s32.totalorder %s20_s18, %s20_s18 }
  0x10   :  { %p861_p5 = scmp.ne.s32.totalorder %s20_s18, %s860_s24  ;;  %p866_p7 = scmp.lt.s32.totalorder %s860_s24, %s860_s24 }
  0x12   :  { %p867_p8 = por %p866_p7, %p865_p6 }
  0x14   :  { %p868_p9 = pnand %p867_p8, %p861_p5 }
  0x16   :  { %871 = shalt.err (!%p868_p9)
}
  0x17   :  { %25 = dma.hbm_to_vmem [thread:$0]  %s1004_s0, 1024, %s20_s18, [#allocation3], %s942_s20, %s942_s20, %s943_s21  }
  0x18   :  { %s944_s27 = smov [#allocation7]  }
  0x19   :  { %s43_s28 = sshll.u32 %s944_s27, 4  ;;  %s44_s28 = int_to_ptr.vmem [resolvable:$true] %s43_s28 }
  0x1a   :  { %s880_s29 = scalar_lea.vmem %s44_s28, 2048  ;;  %p885_p11 = scmp.lt.s32.totalorder %s44_s28, %s44_s28 }
  0x1b   :  { %p881_p10 = scmp.ne.s32.totalorder %s44_s28, %s880_s29  ;;  %p886_p12 = scmp.lt.s32.totalorder %s880_s29, %s880_s29 }
  0x1d   :  { %p887_p13 = por %p886_p12, %p885_p11 }
  0x1f   :  { %p888_p0 = pnand %p887_p13, %p881_p10 }
  0x21   :  { %891 = shalt.err (!%p888_p0)
}
  0x22   :  { %s945_s1 = smov 128   ;;  %s946_s30 = smov 8  }
  0x23   :  { %49 = dma.hbm_to_vmem [thread:$0]  %s1006_s2, 2048, %s44_s28, [#allocation6], %s945_s1, %s945_s1, %s946_s30  }
  0x24   :  { %932 = dma.done.wait [#allocation3], 1024  }
  0x25   :  { %933 = vsyncadd [#allocation3], 4294966272 }
  0x26   :  { %934 = dma.done.wait [#allocation6], 3072  }
  0x27   :  { %935 = vsyncadd [#allocation6], 4294964224  ;;  %v816_v0 = vld [vmem:[#allocation5 + $0x38] sm:$0xff]   ;;  %v817_v1 = vld [vmem:[#allocation5 + $0x30] sm:$0xff]   ;;  %s947_s0 = smov [#allocation8]  }
  0x28   :  { %719 = vmatprep.subr.bf16.mxu0 %v816_v0  ;;  %v818_v2 = vld [vmem:[#allocation5 + $0x28] sm:$0xff]   ;;  %v819_v3 = vld [vmem:[#allocation5 + $0x20] sm:$0xff]   ;;  %v820_v5 = vld [vmem:[#allocation5 + $0x18] sm:$0xff]   ;;  %s547_s2 = sshll.u32 %s947_s0, 4  ;;  %s548_s2 = int_to_ptr.vmem [resolvable:$true] %s547_s2 }
  0x29   :  { %720 = vmatpush3.bf16.msra.mxu0 %v816_v0  ;;  %v824_v4 = vld [vmem:[#allocation2] sm:$0xff]   ;;  %v821_v6 = vld [vmem:[#allocation5 + $0x10] sm:$0xff]   ;;  %v380_v7 = vld [vmem:[#allocation7 + $0x78] sm:$0xff]  ;;  %s892_s7 = scalar_lea.vmem %s548_s2, 1024  ;;  %p897_p2 = scmp.lt.s32.totalorder %s548_s2, %s548_s2 }
  0x2a   :  { %721 = vmatprep.subr.bf16.mxu0 %v817_v1  ;;  %735 = vmatprep.mubr.bf16.mxu0 %v824_v4  ;;  %v379_v8 = vld [vmem:[#allocation7 + $0x70] sm:$0xff]  ;;  %v378_v9 = vld [vmem:[#allocation7 + $0x68] sm:$0xff]  ;;  %v377_v11 = vld [vmem:[#allocation7 + $0x60] sm:$0xff]  ;;  %p893_p1 = scmp.ne.s32.totalorder %s548_s2, %s892_s7  ;;  %p898_p3 = scmp.lt.s32.totalorder %s892_s7, %s892_s7 }
  0x2b   :  { %751 = vmatprep.subr.mxu1 %v380_v7  ;;  %v822_v10 = vld [vmem:[#allocation5 + $0x8] sm:$0xff]   ;;  %v376_v12 = vld [vmem:[#allocation7 + $0x58] sm:$0xff]  ;;  %v823_v13 = vld [vmem:[#allocation5] sm:$0xff]  }
  0x2c   :  { %752 = vmatpush3.msra.mxu1 %v380_v7  ;;  %v375_v14 = vld [vmem:[#allocation7 + $0x50] sm:$0xff]  ;;  %v374_v15 = vld [vmem:[#allocation7 + $0x48] sm:$0xff]  ;;  %v373_v16 = vld [vmem:[#allocation7 + $0x40] sm:$0xff]  ;;  %p899_p4 = por %p898_p3, %p897_p2 }
  0x2d   :  { %722 = vmatpush3.bf16.msra.mxu0 %v817_v1  ;;  %753 = vmatprep.subr.mxu1 %v379_v8  ;;  %v825_v17 = vld [vmem:[#allocation2 + $0x8] sm:$0xff]   ;;  %v372_v18 = vld [vmem:[#allocation7 + $0x38] sm:$0xff]  ;;  %v826_v19 = vld [vmem:[#allocation2 + $0x10] sm:$0xff]  }
  0x2e   :  { %723 = vmatprep.subr.bf16.mxu0 %v818_v2  ;;  %754 = vmatpush3.msra.mxu1 %v379_v8  ;;  %v371_v20 = vld [vmem:[#allocation7 + $0x30] sm:$0xff]  ;;  %v370_v21 = vld [vmem:[#allocation7 + $0x28] sm:$0xff]  ;;  %v369_v22 = vld [vmem:[#allocation7 + $0x20] sm:$0xff]  ;;  %p900_p5 = pnand %p899_p4, %p893_p1 }
  0x2f   :  { %755 = vmatprep.subr.mxu1 %v378_v9  ;;  %v827_v23 = vld [vmem:[#allocation2 + $0x18] sm:$0xff]   ;;  %v828_v25 = vld [vmem:[#allocation2 + $0x20] sm:$0xff]   ;;  %v829_v26 = vld [vmem:[#allocation2 + $0x28] sm:$0xff]  }
  0x30   :  { %756 = vmatpush3.msra.mxu1 %v378_v9  ;;  %v368_v24 = vld [vmem:[#allocation7 + $0x18] sm:$0xff]  ;;  %v830_v27 = vld [vmem:[#allocation2 + $0x30] sm:$0xff]   ;;  %v366_v30 = vld [vmem:[#allocation7 + $0x8] sm:$0xff] }
  0x31   :  { %724 = vmatpush3.bf16.msra.mxu0 %v818_v2  ;;  %757 = vmatprep.subr.mxu1 %v377_v11  ;;  %v831_v28 = vld [vmem:[#allocation2 + $0x38] sm:$0xff]   ;;  %v367_v29 = vld [vmem:[#allocation7 + $0x10] sm:$0xff]  ;;  %v365_v31 = vld [vmem:[#allocation7] sm:$0xff] }
  0x32   :  { %725 = vmatprep.subr.bf16.mxu0 %v819_v3  ;;  %758 = vmatpush3.msra.mxu1 %v377_v11 }
  0x33   :  { %759 = vmatprep.subr.mxu1 %v376_v12 }
  0x34   :  { %760 = vmatpush3.msra.mxu1 %v376_v12 }
  0x35   :  { %726 = vmatpush3.bf16.msra.mxu0 %v819_v3  ;;  %761 = vmatprep.subr.mxu1 %v375_v14 }
  0x36   :  { %727 = vmatprep.subr.bf16.mxu0 %v820_v5  ;;  %762 = vmatpush3.msra.mxu1 %v375_v14 }
  0x37   :  { %763 = vmatprep.subr.mxu1 %v374_v15 }
  0x38   :  { %764 = vmatpush3.msra.mxu1 %v374_v15 }
  0x39   :  { %728 = vmatpush3.bf16.msra.mxu0 %v820_v5  ;;  %765 = vmatprep.subr.mxu1 %v373_v16 }
  0x3a   :  { %729 = vmatprep.subr.bf16.mxu0 %v821_v6  ;;  %766 = vmatpush3.msra.mxu1 %v373_v16 }
  0x3b   :  { %767 = vmatprep.subr.mxu1 %v372_v18 }
  0x3c   :  { %768 = vmatpush3.msra.mxu1 %v372_v18 }
  0x3d   :  { %730 = vmatpush3.bf16.msra.mxu0 %v821_v6  ;;  %769 = vmatprep.subr.mxu1 %v371_v20 }
  0x3e   :  { %731 = vmatprep.subr.bf16.mxu0 %v822_v10  ;;  %770 = vmatpush3.msra.mxu1 %v371_v20 }
  0x3f   :  { %771 = vmatprep.subr.mxu1 %v370_v21 }
  0x40   :  { %772 = vmatpush3.msra.mxu1 %v370_v21 }
  0x41   :  { %732 = vmatpush3.bf16.msra.mxu0 %v822_v10  ;;  %773 = vmatprep.subr.mxu1 %v369_v22 }
  0x42   :  { %733 = vmatprep.subr.bf16.mxu0 %v823_v13  ;;  %774 = vmatpush3.msra.mxu1 %v369_v22 }
  0x43   :  { %775 = vmatprep.subr.mxu1 %v368_v24 }
  0x44   :  { %776 = vmatpush3.msra.mxu1 %v368_v24 }
  0x45   :  { %734 = vmatpush3.bf16.msra.mxu0 %v823_v13  ;;  %777 = vmatprep.subr.mxu1 %v367_v29 }
  0x46   :  { %778 = vmatpush3.msra.mxu1 %v367_v29 }
  0x47   :  { %779 = vmatprep.subr.mxu1 %v366_v30 }
  0x48   :  { %736 = vmatmul.mubr.bf16.vlgmr.msra.gmra.mxu0 %v825_v17  ;;  %780 = vmatpush3.msra.mxu1 %v366_v30 }
  0x49   :  { %739 = vmatprep.mubr.bf16.mxu0 %v826_v19  ;;  %781 = vmatprep.subr.mxu1 %v365_v31 }
  0x4a   :  { %782 = vmatpush3.msra.mxu1 %v365_v31 }
  0x50   :  { %740 = vmatmul.mubr.bf16.gmra.mxu0 %v827_v23 }
  0x51   :  { %743 = vmatprep.mubr.bf16.mxu0 %v828_v25 }
  0x58   :  { %744 = vmatmul.mubr.bf16.gmra.mxu0 %v829_v26 }
  0x59   :  { %747 = vmatprep.mubr.bf16.mxu0 %v830_v27 }
  0x60   :  { %748 = vmatmul.mubr.bf16.gmra.mxu0 %v831_v28 }
 0x108   :  { %v737_v32 = vpop.f32.mrf.mxu0 }
 0x10a   :  { %v222_v33 = vpop.f32.mrf.mxu0 }
 0x10b   :  { %783 = vmatprep.mubr.f32.mxu1 %v222_v33 }
 0x10c   :  { %v738_v34 = vpop.f32.mrf.mxu0 }
 0x10d   :  { %v632_v35 = vpack.c.bf16 %v738_v34, %v737_v32 }
 0x10e   :  { %v225_v36 = vpop.f32.mrf.mxu0 }
 0x10f   :  { %664 = vst [vmem:[#allocation8 + $0x8] sm:$0xff] %v632_v35   ;;  %v627_v37 = vpack.c.bf16 %v225_v36, %v222_v33  ;;  %784 = vmatmul.mubr.f32.vlgmr.msra.gmra.mxu1 %v225_v36 }
 0x110   :  { %v741_v38 = vpop.f32.mrf.mxu0  ;;  %786 = vmatprep.mubr.f32.mxu1 %v737_v32 }
 0x111   :  { %628 = vst [vmem:[#allocation8] sm:$0xff] %v627_v37  }
 0x112   :  { %v238_v39 = vpop.f32.mrf.mxu0 }
 0x113   :  { %787 = vmatmul.mubr.f32.gmra.mxu1 %v738_v34 }
 0x114   :  { %v742_v40 = vpop.f32.mrf.mxu0  ;;  %789 = vmatprep.mubr.f32.mxu1 %v238_v39 }
 0x115   :  { %v642_v41 = vpack.c.bf16 %v742_v40, %v741_v38 }
 0x116   :  { %v241_v42 = vpop.f32.mrf.mxu0 }
 0x117   :  { %666 = vst [vmem:[#allocation8 + $0x18] sm:$0xff] %v642_v41   ;;  %v637_v43 = vpack.c.bf16 %v241_v42, %v238_v39  ;;  %790 = vmatmul.mubr.f32.gmra.mxu1 %v241_v42 }
 0x118   :  { %v745_v44 = vpop.f32.mrf.mxu0  ;;  %792 = vmatprep.mubr.f32.mxu1 %v741_v38 }
 0x119   :  { %665 = vst [vmem:[#allocation8 + $0x10] sm:$0xff] %v637_v43  }
 0x11a   :  { %v254_v45 = vpop.f32.mrf.mxu0 }
 0x11b   :  { %793 = vmatmul.mubr.f32.gmra.mxu1 %v742_v40 }
 0x11c   :  { %v746_v46 = vpop.f32.mrf.mxu0  ;;  %795 = vmatprep.mubr.f32.mxu1 %v254_v45 }
 0x11d   :  { %v652_v47 = vpack.c.bf16 %v746_v46, %v745_v44 }
 0x11e   :  { %v257_v48 = vpop.f32.mrf.mxu0 }
 0x11f   :  { %668 = vst [vmem:[#allocation8 + $0x28] sm:$0xff] %v652_v47   ;;  %v647_v49 = vpack.c.bf16 %v257_v48, %v254_v45  ;;  %796 = vmatmul.mubr.f32.gmra.mxu1 %v257_v48 }
 0x120   :  { %v749_v50 = vpop.f32.mrf.mxu0  ;;  %798 = vmatprep.mubr.f32.mxu1 %v745_v44 }
 0x121   :  { %667 = vst [vmem:[#allocation8 + $0x20] sm:$0xff] %v647_v49  }
 0x122   :  { %v270_v51 = vpop.f32.mrf.mxu0 }
 0x123   :  { %799 = vmatmul.mubr.f32.gmra.mxu1 %v746_v46 }
 0x124   :  { %v750_v52 = vpop.f32.mrf.mxu0  ;;  %801 = vmatprep.mubr.f32.mxu1 %v270_v51 }
 0x125   :  { %v662_v53 = vpack.c.bf16 %v750_v52, %v749_v50 }
 0x126   :  { %v273_v54 = vpop.f32.mrf.mxu0 }
 0x127   :  { %670 = vst [vmem:[#allocation8 + $0x38] sm:$0xff] %v662_v53   ;;  %v657_v55 = vpack.c.bf16 %v273_v54, %v270_v51  ;;  %802 = vmatmul.mubr.f32.gmra.mxu1 %v273_v54 }
 0x128   :  { %804 = vmatprep.mubr.f32.mxu1 %v749_v50 }
 0x129   :  { %669 = vst [vmem:[#allocation8 + $0x30] sm:$0xff] %v657_v55  }
 0x12b   :  { %805 = vmatmul.mubr.f32.gmra.mxu1 %v750_v52 }
 0x12c   :  { %903 = shalt.err (!%p900_p5)
}
 0x12d   :  { %553 = dma.vmem_to_hbm [thread:$0]  %s548_s2, 1024, %s1007_s3, [#allocation4], %s942_s20, %s942_s20, %s943_s21  }
 0x12e   :  { %s948_s3 = smov [#allocation9]  }
 0x12f   :  { %s559_s10 = sshll.u32 %s948_s3, 4  ;;  %s560_s10 = int_to_ptr.vmem [resolvable:$true] %s559_s10 }
 0x130   :  { %s912_s11 = scalar_lea.vmem %s560_s10, 2048  ;;  %p917_p7 = scmp.lt.s32.totalorder %s560_s10, %s560_s10 }
 0x131   :  { %p913_p6 = scmp.ne.s32.totalorder %s560_s10, %s912_s11  ;;  %p918_p8 = scmp.lt.s32.totalorder %s912_s11, %s912_s11 }
 0x133   :  { %p919_p9 = por %p918_p8, %p917_p7 }
 0x135   :  { %p920_p10 = pnand %p919_p9, %p913_p6 }
 0x1cf   :  { %v785_v56 = vpop.f32.mrf.mxu1 }
 0x1d0   :  { %527 = vst [vmem:[#allocation9 + $0x8] sm:$0xff] %v785_v56 }
 0x1d1   :  { %v447_v57 = vpop.f32.mrf.mxu1 }
 0x1d2   :  { %526 = vst [vmem:[#allocation9] sm:$0xff] %v447_v57 }
 0x1d3   :  { %v788_v58 = vpop.f32.mrf.mxu1 }
 0x1d4   :  { %529 = vst [vmem:[#allocation9 + $0x18] sm:$0xff] %v788_v58 }
 0x1d5   :  { %v457_v59 = vpop.f32.mrf.mxu1 }
 0x1d6   :  { %528 = vst [vmem:[#allocation9 + $0x10] sm:$0xff] %v457_v59 }
 0x1d7   :  { %v791_v60 = vpop.f32.mrf.mxu1 }
 0x1d8   :  { %531 = vst [vmem:[#allocation9 + $0x28] sm:$0xff] %v791_v60 }
 0x1d9   :  { %v467_v61 = vpop.f32.mrf.mxu1 }
 0x1da   :  { %530 = vst [vmem:[#allocation9 + $0x20] sm:$0xff] %v467_v61 }
 0x1db   :  { %v794_v62 = vpop.f32.mrf.mxu1 }
 0x1dc   :  { %533 = vst [vmem:[#allocation9 + $0x38] sm:$0xff] %v794_v62 }
 0x1dd   :  { %v477_v63 = vpop.f32.mrf.mxu1 }
 0x1de   :  { %532 = vst [vmem:[#allocation9 + $0x30] sm:$0xff] %v477_v63 }
 0x1df   :  { %v797_v0 = vpop.f32.mrf.mxu1 }
 0x1e0   :  { %535 = vst [vmem:[#allocation9 + $0x48] sm:$0xff] %v797_v0 }
 0x1e1   :  { %v487_v1 = vpop.f32.mrf.mxu1 }
 0x1e2   :  { %534 = vst [vmem:[#allocation9 + $0x40] sm:$0xff] %v487_v1 }
 0x1e3   :  { %v800_v2 = vpop.f32.mrf.mxu1 }
 0x1e4   :  { %537 = vst [vmem:[#allocation9 + $0x58] sm:$0xff] %v800_v2 }
 0x1e5   :  { %v497_v3 = vpop.f32.mrf.mxu1 }
 0x1e6   :  { %536 = vst [vmem:[#allocation9 + $0x50] sm:$0xff] %v497_v3 }
 0x1e7   :  { %v803_v4 = vpop.f32.mrf.mxu1 }
 0x1e8   :  { %539 = vst [vmem:[#allocation9 + $0x68] sm:$0xff] %v803_v4 }
 0x1e9   :  { %v507_v5 = vpop.f32.mrf.mxu1 }
 0x1ea   :  { %538 = vst [vmem:[#allocation9 + $0x60] sm:$0xff] %v507_v5 }
 0x1eb   :  { %v806_v6 = vpop.f32.mrf.mxu1 }
 0x1ec   :  { %541 = vst [vmem:[#allocation9 + $0x78] sm:$0xff] %v806_v6 }
 0x1ed   :  { %v517_v7 = vpop.f32.mrf.mxu1 }
 0x1ee   :  { %540 = vst [vmem:[#allocation9 + $0x70] sm:$0xff] %v517_v7 }
 0x1ef   :  { %923 = shalt.err (!%p920_p10)
}
 0x1f0   :  { %565 = dma.vmem_to_hbm [thread:$0]  %s560_s10, 2048, %s1008_s4, [#allocation10], %s945_s1, %s945_s1, %s946_s30  }
 0x1f1   :  { %936 = dma.done.wait [#allocation4], 1024  }
 0x1f2   :  { %937 = vsyncadd [#allocation4], 4294966272 }
 0x1f3   :  { %938 = dma.done.wait [#allocation10], 2048  }
 0x1f4   :  { %939 = vsyncadd [#allocation10], 4294965248 }
 0x1f5   :  { %572 = vsyncpa [#allocation3], 1 }
 0x1f6   :  { %573 = vsyncpa [#allocation6], 1 }
 0x1f7   :  { %574 = vsyncpa [#allocation4], 1 }
 0x1f8   :  { %575 = vsyncpa [#allocation10], 1 }

</bundles_post_ra>
